<compile_context>
chip_gen: v7x
topology: tpu7x:2x2x1
jax: 0.10.0
libtpu: 0.0.40
codegen_flags: <defaults>
</compile_context>

<pallas_src>
import jax
import jax.numpy as jnp
from jax.experimental import pallas as pl
from jax.experimental.pallas import tpu as pltpu


def _round_up(v, m):
    return (v + m - 1) // m * m


# ----------------------------------------------------------------------------
# Kernel: one (TN, H) row tile -> fused (TN, 3H) output [x_out | x_mean | x_std].
# ----------------------------------------------------------------------------
def _vgae_encoder_kernel(x_ref, noise_ref, w1_ref, b1_ref, w2_ref, b2_ref,
                         out_ref):
    H = noise_ref.shape[-1]

    x = x_ref[...]                                              # [TN, H]

    # Fused first layer (mean & std branches share the LHS): [TN,H] @ [H,2H].
    h = jnp.dot(x, w1_ref[...], preferred_element_type=jnp.float32) + b1_ref[...]
    h = jnp.maximum(h, 0.0)                                     # [TN, 2H]

    # Fused second layer: block-diagonal [2H,2H] weight keeps the two branches
    # independent while issuing a single MXU op / single weight block.
    z = jnp.dot(h, w2_ref[...], preferred_element_type=jnp.float32) + b2_ref[...]
    mean = z[:, :H]                                             # [TN, H]
    z_s = z[:, H:]                                              # [TN, H]

    # Softplus (numerically stable, matches nn.Softplus(beta=1)); x_std > 0.
    std = jnp.maximum(z_s, 0.0) + jnp.log1p(jnp.exp(-jnp.abs(z_s)))

    # Reparameterization + single fused store (one output DMA per tile).
    out_ref[...] = jnp.concatenate(
        [noise_ref[...] * std + mean, mean, std], axis=1)


# ----------------------------------------------------------------------------
# One-time (init-time) weight fusion — NOT per forward call.
# ----------------------------------------------------------------------------
def fuse_vgae_encoder_params(params):
    """params = (w1m, b1m, w2m, b2m, w1s, b1s, w2s, b2s); weights stored [in, out].

    Returns (w1c [H,2H], b1c [1,2H], w2bd [2H,2H], b2c [1,2H]).
    """
    w1m, b1m, w2m, b2m, w1s, b1s, w2s, b2s = params
    H = w1m.shape[0]
    dt = w1m.dtype
    w1c = jnp.concatenate([w1m, w1s.astype(dt)], axis=1)                 # [H, 2H]
    b1c = jnp.concatenate([b1m, b1s]).astype(dt).reshape(1, 2 * H)       # [1, 2H]
    zH = jnp.zeros((H, H), dt)
    w2bd = jnp.concatenate(
        [jnp.concatenate([w2m.astype(dt), zH], axis=1),
         jnp.concatenate([zH, w2s.astype(dt)], axis=1)], axis=0)         # [2H, 2H]
    b2c = jnp.concatenate([b2m, b2s]).astype(dt).reshape(1, 2 * H)       # [1, 2H]
    return w1c, b1c, w2bd, b2c


# ----------------------------------------------------------------------------
# Wrapper: row tiling + pallas_call.
# ----------------------------------------------------------------------------
def vgae_encoder_forward(x, fused_params, noise, *, row_tile=1024,
                         vmem_limit_bytes=48 * 1024 * 1024):
    """x: [N,H] node embeddings (backbone output); noise ~ N(0,1), shape [N,H]."""
    w1c, b1c, w2bd, b2c = fused_params
    N, H = x.shape
    assert noise.shape == (N, H)

    # Row tiling: largest tile up to row_tile, but guarantee >= 2 row tiles
    # when there is enough work so the "parallel" axis shards across v7x's 2 TCs.
    tn = min(int(row_tile), _round_up(N, 8))
    if N > 8 and _round_up(N, tn) // tn < 2:
        tn = max(8, _round_up((N + 1) // 2, 8))
    n_pad = _round_up(N, tn)
    if n_pad != N:
        pad = ((0, n_pad - N), (0, 0))
        xp = jnp.pad(x, pad)
        noisep = jnp.pad(noise, pad)
    else:
        xp, noisep = x, noise
    grid = (n_pad // tn,)

    row_spec = pl.BlockSpec((tn, H), lambda i: (i, 0))
    out_spec = pl.BlockSpec((tn, 3 * H), lambda i: (i, 0))

    # Constant weight/bias blocks (same block every grid step).
    # NOTE: could be single-buffered (pipeline_mode=pl.Buffered(1)) to save
    # VMEM for large H; omitted here for maximum portability.
    def full(arr):
        nd = arr.ndim
        return pl.BlockSpec(arr.shape, lambda i, _nd=nd: (0,) * _nd)

    out3 = pl.pallas_call(
        _vgae_encoder_kernel,
        grid=grid,
        in_specs=[row_spec, row_spec,
                  full(w1c), full(b1c), full(w2bd), full(b2c)],
        out_specs=out_spec,
        out_shape=jax.ShapeDtypeStruct((n_pad, 3 * H), jnp.float32),
        compiler_params=pltpu.CompilerParams(
            dimension_semantics=("parallel",),
            vmem_limit_bytes=vmem_limit_bytes,
        ),
    )(xp, noisep, w1c, b1c, w2bd, b2c)

    x_out = out3[:N, :H]
    x_mean = out3[:N, H:2 * H]
    x_std = out3[:N, 2 * H:]
    return x_out, x_mean, x_std


# ----------------------------------------------------------------------------
# Demo / self-check.
# ----------------------------------------------------------------------------
def _linear_init(key, fan_in, fan_out):
    # Mimics torch.nn.Linear default init; weight stored as [in, out].
    wk, bk = jax.random.split(key)
    bound = 1.0 / (fan_in ** 0.5)
    w = jax.random.uniform(wk, (fan_in, fan_out), jnp.float32, -bound, bound)
    b = jax.random.uniform(bk, (fan_out,), jnp.float32, -bound, bound)
    return w, b


if __name__ == "__main__":
    key = jax.random.PRNGKey(0)
    ks = jax.random.split(key, 8)

    user_num, item_num = 40, 60
    N = user_num + item_num          # 100 nodes total
    H = 32                           # latdim / hidden

    # TODO(synk): x = model.forward_graphcl(adj) — backbone GCN is a separate
    # module; its output node embeddings are the input here.
    x = jax.random.normal(ks[0], (N, H), dtype=jnp.float32)

    w1m, b1m = _linear_init(ks[1], H, H)     # encoder_mean layer 1
    w2m, b2m = _linear_init(ks[2], H, H)     # encoder_mean layer 2
    w1s, b1s = _linear_init(ks[3], H, H)     # encoder_std layer 1
    w2s, b2s = _linear_init(ks[4], H, H)     # encoder_std layer 2
    params = (w1m, b1m, w2m, b2m, w1s, b1s, w2s, b2s)

    # One-time weight fusion (init time, not per forward call).
    fused = jax.block_until_ready(fuse_vgae_encoder_params(params))

    # gaussian_noise = torch.randn(x_mean.shape); drawn outside the kernel so
    # the forward is fully deterministic and checkable given the key.
    noise = jax.random.normal(ks[5], (N, H), dtype=jnp.float32)

    x_out, x_mean, x_std = vgae_encoder_forward(x, fused, noise, row_tile=64)
    (x_out, x_mean, x_std) = jax.block_until_ready((x_out, x_mean, x_std))

    # Plain-JAX reference.
    hp = jax.lax.Precision.HIGHEST
    ref_hm = jnp.maximum(jnp.dot(x, w1m, precision=hp) + b1m, 0.0)
    ref_mean = jnp.dot(ref_hm, w2m, precision=hp) + b2m
    ref_hs = jnp.maximum(jnp.dot(x, w1s, precision=hp) + b1s, 0.0)
    ref_zs = jnp.dot(ref_hs, w2s, precision=hp) + b2s
    ref_std = jnp.maximum(ref_zs, 0.0) + jnp.log1p(jnp.exp(-jnp.abs(ref_zs)))
    ref_out = noise * ref_std + ref_mean

    assert x_out.shape == (N, H) and x_mean.shape == (N, H) and x_std.shape == (N, H)
    assert bool(jnp.all(jnp.isfinite(x_out)))
    assert bool(jnp.all(x_std > 0.0))
    assert bool(jnp.allclose(x_mean, ref_mean, atol=1e-3, rtol=1e-3))
    assert bool(jnp.allclose(x_std, ref_std, atol=1e-3, rtol=1e-3))
    assert bool(jnp.allclose(x_out, ref_out, atol=1e-3, rtol=1e-3))

    print("KERNEL_OK")
</pallas_src>

<mosaic_0001>
module attributes {stable_mosaic.version = 11 : i64} {
  func.func @_vgae_encoder_kernel(%arg0: i32, %arg1: memref<64x32xf32, #tpu.memory_space<vmem>>, %arg2: memref<64x32xf32, #tpu.memory_space<vmem>>, %arg3: memref<32x64xf32, #tpu.memory_space<vmem>>, %arg4: memref<1x64xf32, #tpu.memory_space<vmem>>, %arg5: memref<64x64xf32, #tpu.memory_space<vmem>>, %arg6: memref<1x64xf32, #tpu.memory_space<vmem>>, %arg7: memref<64x96xf32, #tpu.memory_space<vmem>>) attributes {dimension_semantics = [#tpu.dimension_semantics<parallel>], iteration_bounds = array<i64: 2>, scalar_prefetch = 0 : i64, scratch_operands = 0 : i64, tpu.core_type = #tpu.core_type<tc>, window_params = [{transform_indices = @transform_0, window_bounds = array<i64: 64, 32>}, {transform_indices = @transform_1, window_bounds = array<i64: 64, 32>}, {pipeline_mode = #tpu.pipeline_mode<synchronous>, transform_indices = @transform_2, window_bounds = array<i64: 32, 64>}, {pipeline_mode = #tpu.pipeline_mode<synchronous>, transform_indices = @transform_3, window_bounds = array<i64: 1, 64>}, {pipeline_mode = #tpu.pipeline_mode<synchronous>, transform_indices = @transform_4, window_bounds = array<i64: 64, 64>}, {pipeline_mode = #tpu.pipeline_mode<synchronous>, transform_indices = @transform_5, window_bounds = array<i64: 1, 64>}, {transform_indices = @transform_6, window_bounds = array<i64: 64, 96>}]} {
    %c0 = arith.constant 0 : index
    %c0_0 = arith.constant 0 : index
    %0 = vector.load %arg1[%c0, %c0_0] : memref<64x32xf32, #tpu.memory_space<vmem>>, vector<64x32xf32>
    %c0_1 = arith.constant 0 : index
    %c0_2 = arith.constant 0 : index
    %1 = vector.load %arg3[%c0_1, %c0_2] : memref<32x64xf32, #tpu.memory_space<vmem>>, vector<32x64xf32>
    %cst = arith.constant dense<0.000000e+00> : vector<64x64xf32>
    %2 = tpu.matmul %0, %1, %cst {dimension_numbers = #tpu.dot_dimension_numbers<[1], [0], [0], [1], [0, 0, 1, 1], [], []>} : vector<64x32xf32>, vector<32x64xf32>, vector<64x64xf32> -> vector<64x64xf32>
    %c0_3 = arith.constant 0 : index
    %c0_4 = arith.constant 0 : index
    %3 = vector.load %arg4[%c0_3, %c0_4] : memref<1x64xf32, #tpu.memory_space<vmem>>, vector<1x64xf32>
    %4 = vector.broadcast %3 : vector<1x64xf32> to vector<64x64xf32>
    %5 = arith.addf %2, %4 : vector<64x64xf32>
    %cst_5 = arith.constant 0.000000e+00 : f32
    %6 = vector.broadcast %cst_5 : f32 to vector<64x64xf32>
    %7 = arith.maximumf %5, %6 : vector<64x64xf32>
    %c0_6 = arith.constant 0 : index
    %c0_7 = arith.constant 0 : index
    %8 = vector.load %arg5[%c0_6, %c0_7] : memref<64x64xf32, #tpu.memory_space<vmem>>, vector<64x64xf32>
    %cst_8 = arith.constant dense<0.000000e+00> : vector<64x64xf32>
    %9 = tpu.matmul %7, %8, %cst_8 {dimension_numbers = #tpu.dot_dimension_numbers<[1], [0], [0], [1], [0, 0, 1, 1], [], []>} : vector<64x64xf32>, vector<64x64xf32>, vector<64x64xf32> -> vector<64x64xf32>
    %c0_9 = arith.constant 0 : index
    %c0_10 = arith.constant 0 : index
    %10 = vector.load %arg6[%c0_9, %c0_10] : memref<1x64xf32, #tpu.memory_space<vmem>>, vector<1x64xf32>
    %11 = vector.broadcast %10 : vector<1x64xf32> to vector<64x64xf32>
    %12 = arith.addf %9, %11 : vector<64x64xf32>
    %13 = vector.extract_strided_slice %12 {offsets = [0, 0], sizes = [64, 32], strides = [1, 1]} : vector<64x64xf32> to vector<64x32xf32>
    %14 = vector.extract_strided_slice %12 {offsets = [0, 32], sizes = [64, 32], strides = [1, 1]} : vector<64x64xf32> to vector<64x32xf32>
    %cst_11 = arith.constant 0.000000e+00 : f32
    %15 = vector.broadcast %cst_11 : f32 to vector<64x32xf32>
    %16 = arith.maximumf %14, %15 : vector<64x32xf32>
    %17 = math.absf %14 : vector<64x32xf32>
    %cst_12 = arith.constant 0.000000e+00 : f32
    %18 = vector.broadcast %cst_12 : f32 to vector<64x32xf32>
    %19 = arith.subf %18, %17 : vector<64x32xf32>
    %20 = math.exp %19 : vector<64x32xf32>
    %21 = math.log1p %20 : vector<64x32xf32>
    %22 = arith.addf %16, %21 : vector<64x32xf32>
    %c0_13 = arith.constant 0 : index
    %c0_14 = arith.constant 0 : index
    %23 = vector.load %arg2[%c0_13, %c0_14] : memref<64x32xf32, #tpu.memory_space<vmem>>, vector<64x32xf32>
    %24 = arith.mulf %23, %22 : vector<64x32xf32>
    %25 = arith.addf %24, %13 : vector<64x32xf32>
    %26 = tpu.concatenate %25, %13, %22 in 1 : vector<64x32xf32>, vector<64x32xf32>, vector<64x32xf32> -> vector<64x96xf32>
    %c0_15 = arith.constant 0 : index
    %c0_16 = arith.constant 0 : index
    %27 = vector.load %arg7[%c0_15, %c0_16] : memref<64x96xf32, #tpu.memory_space<vmem>>, vector<64x96xf32>
    tpu.vector_store %arg7[%c0_15, %c0_16], %26 {strides = array<i32>} : memref<64x96xf32, #tpu.memory_space<vmem>>, vector<64x96xf32>,
    return
  }
  func.func @transform_0(%arg0: i32) -> (i32, i32) {
    %c0_i32 = arith.constant 0 : i32
    %c0_i32_0 = arith.constant 0 : i32
    return %arg0, %c0_i32 : i32, i32
  }
  func.func @transform_1(%arg0: i32) -> (i32, i32) {
    %c0_i32 = arith.constant 0 : i32
    %c0_i32_0 = arith.constant 0 : i32
    return %arg0, %c0_i32 : i32, i32
  }
  func.func @transform_2(%arg0: i32) -> (i32, i32) {
    %c0_i32 = arith.constant 0 : i32
    %c0_i32_0 = arith.constant 0 : i32
    %c0_i32_1 = arith.constant 0 : i32
    return %c0_i32, %c0_i32_0 : i32, i32
  }
  func.func @transform_3(%arg0: i32) -> (i32, i32) {
    %c0_i32 = arith.constant 0 : i32
    %c0_i32_0 = arith.constant 0 : i32
    %c0_i32_1 = arith.constant 0 : i32
    return %c0_i32, %c0_i32_0 : i32, i32
  }
  func.func @transform_4(%arg0: i32) -> (i32, i32) {
    %c0_i32 = arith.constant 0 : i32
    %c0_i32_0 = arith.constant 0 : i32
    %c0_i32_1 = arith.constant 0 : i32
    return %c0_i32, %c0_i32_0 : i32, i32
  }
  func.func @transform_5(%arg0: i32) -> (i32, i32) {
    %c0_i32 = arith.constant 0 : i32
    %c0_i32_0 = arith.constant 0 : i32
    %c0_i32_1 = arith.constant 0 : i32
    return %c0_i32, %c0_i32_0 : i32, i32
  }
  func.func @transform_6(%arg0: i32) -> (i32, i32) {
    %c0_i32 = arith.constant 0 : i32
    %c0_i32_0 = arith.constant 0 : i32
    return %arg0, %c0_i32 : i32, i32
  }
}

</mosaic_0001>

<bundles_post_ra>
// kernel: tpu_custom_call.1
= control target key start
LH: loop header
LB: loop body
LE: loop exit
PB: predicated region body
PF: predicated region fallthrough
CT: control target
= control target key end

     0   :  { %s1130_s21 = smov 0   ;;  %s1371_s0 = inlined_call_operand.vmem [shape: f32[128,32], index: 0, kind: input, shape index: {}]   ;;  %s1372_s1 = inlined_call_operand.vmem [shape: f32[128,32], index: 1, kind: input, shape index: {}]   ;;  %s1373_s2 = inlined_call_operand.vmem [shape: f32[32,64], index: 2, kind: input, shape index: {}]   ;;  %s1374_s3 = inlined_call_operand.vmem [shape: f32[1,64], index: 3, kind: input, shape index: {}]   ;;  %s1375_s4 = inlined_call_operand.vmem [shape: f32[64,64], index: 4, kind: input, shape index: {}]   ;;  %s1376_s5 = inlined_call_operand.vmem [shape: f32[1,64], index: 5, kind: input, shape index: {}]   ;;  %s1377_s6 = inlined_call_operand.vmem [shape: f32[128,96], index: 6, kind: output, shape index: {}]  }
   0x1 LB: > { %s904_s22 = sadd.s32 4294967295, %s1091_s21   ;;  %p908_p0 = scmp.ge.s32.totalorder %s1091_s21, 1  ;;  %s1091_s21 = sphi %s1130_s21, %s16_s21  }
   0x2   : > { %p224_p1 = scmp.lt.s32.totalorder %s1091_s21, 3 }
   0x4   : > { %p225_p2 = pnand %p908_p0, %p224_p1 }
   0x5   : > { %v285_v0 = vld [vmem:[%s1373_s2] sm:$0xff] (!%p225_p2)  ;;  %v286_v1 = vld [vmem:[%s1373_s2 + $0x8] sm:$0xff] (!%p225_p2)  ;;  %v287_v2 = vld [vmem:[%s1373_s2 + $0x10] sm:$0xff] (!%p225_p2)  ;;  %s909_s29 = sshll.u32 (!%p225_p2), %s904_s22, 3  ;;  %vm296_vm0 = vcmask (!%p225_p2), 261120   ;;  %vm449_vm1 = vcmask (!%p225_p2), 523264  }
   0x6   : > { %228 = sbr.rel (%p225_p2) target bundleno = 631 (0x277), region = 44  ;;  %v1011_v3 = vpack.c.bf16 (!%p225_p2), %v286_v1, %v285_v0  ;;  %v288_v4 = vld [vmem:[%s1373_s2 + $0x18] sm:$0xff] (!%p225_p2)  ;;  %p260_p3 = scmp.lt.s32.totalorder (!%p225_p2), %s909_s29, 15  ;;  %v434_v5 = vld [vmem:[%s1375_s4] sm:$0xff] (!%p225_p2)  ;;  %v435_v6 = vld [vmem:[%s1375_s4 + $0x8] sm:$0xff] (!%p225_p2)  ;;  %vm827_vm10 = vcmask (!%p225_p2), 785408  }
   0x7   : > { %v1015_v7 = vpack.c.bf16 (!%p225_p2), %v288_v4, %v287_v2  ;;  %v1019_v8 = vpack.c.bf16 (!%p225_p2), %v435_v6, %v434_v5  ;;  %v436_v9 = vld [vmem:[%s1375_s4 + $0x10] sm:$0xff] (!%p225_p2)  ;;  %v437_v10 = vld [vmem:[%s1375_s4 + $0x18] sm:$0xff] (!%p225_p2)  ;;  %v438_v12 = vld [vmem:[%s1375_s4 + $0x20] sm:$0xff] (!%p225_p2)  ;;  %s1093_s9 = smov (!%p225_p2), 32   ;;  %s1094_s10 = smov (!%p225_p2), 96  }
   0x8   : > { %1012 = vmatprep.subr.bf16.mxu0 (!%p225_p2), %v1011_v3  ;;  %v1023_v11 = vpack.c.bf16 (!%p225_p2), %v437_v10, %v436_v9  ;;  %v439_v13 = vld [vmem:[%s1375_s4 + $0x28] sm:$0xff] (!%p225_p2)  ;;  %v440_v23 = vld [vmem:[%s1375_s4 + $0x30] sm:$0xff] (!%p225_p2)  ;;  %v441_v24 = vld [vmem:[%s1375_s4 + $0x38] sm:$0xff] (!%p225_p2) }
   0x9   : > { %1014 = vmatpush3.bf16.msra.mxu0 (!%p225_p2), %v1011_v3  ;;  %1035 = vmatprep.subr.bf16.mxu1 (!%p225_p2), %v1019_v8  ;;  %v1027_v16 = vpack.c.bf16 (!%p225_p2), %v439_v13, %v438_v12  ;;  %v1031_v25 = vpack.c.bf16 (!%p225_p2), %v441_v24, %v440_v23  ;;  %v915_v26 = vld [vmem:[%s1374_s3] ss:$0 sm:$0xff] (!%p225_p2) }
   0xa   : > { %1016 = vmatprep.subr.bf16.mxu0 (!%p225_p2), %v1015_v7  ;;  %1039 = vmatpush3.bf16.msra.mxu1 (!%p225_p2), %v1019_v8  ;;  %v924_v51 = vld [vmem:[%s1376_s5] ss:$0 sm:$0xff] (!%p225_p2) }
   0xb   : > { %1036 = vmatprep.subr.bf16.mxu1 (!%p225_p2), %v1023_v11 }
   0xd   : > { %s1383_s29 = smov (!%p260_p3, %s909_s29), 15  ;;  %1018 = vmatpush3.bf16.msra.mxu0 %v1015_v7 }
   0xe   : > { %s1162_s16 = sshll.u32 %s1383_s29, 3  ;;  %1020 = vmatprep.subr.bf16.mxu0 %v1019_v8  ;;  %1040 = vmatpush3.bf16.msra.mxu1 %v1023_v11 }
   0xf   : > { %s263_s24 = scalar_lea.vmem %s1371_s0, %s1162_s16  ;;  %1037 = vmatprep.subr.bf16.mxu1 %v1027_v16  ;;  %s1312_s13 = scalar_lea.vmem %s1372_s1, %s1162_s16 }
  0x10   : > { %v277_v14 = vld [vmem:[%s263_s24] sm:$0xff]  ;;  %v278_v15 = vld [vmem:[%s263_s24 + $0x8] sm:$0xff]  ;;  %v279_v17 = vld [vmem:[%s263_s24 + $0x10] sm:$0xff]  ;;  %s1322_s17 = scalar_lea.vmem %s1377_s6, %s1162_s16 }
  0x11   : > { %971 = vmatprep.mubr.msk.f32.mxu0 %vm296_vm0, %v277_v14  ;;  %v280_v18 = vld [vmem:[%s263_s24 + $0x18] sm:$0xff]  ;;  %v281_v19 = vld [vmem:[%s263_s24 + $0x20] sm:$0xff]  ;;  %v282_v20 = vld [vmem:[%s263_s24 + $0x28] sm:$0xff] }
  0x12   : > { %972 = vmatmul.mubr.msk.f32.vlgmr.msra.gmra.mrb[0].mxu0 %vm296_vm0, %v278_v15  ;;  %1041 = vmatpush3.bf16.msra.mxu1 %v1027_v16  ;;  %v283_v21 = vld [vmem:[%s263_s24 + $0x30] sm:$0xff]  ;;  %v284_v22 = vld [vmem:[%s263_s24 + $0x38] sm:$0xff] }
  0x13   : > { %974 = vmatprep.mubr.msk.f32.mxu0 %vm296_vm0, %v279_v17  ;;  %1022 = vmatpush3.bf16.msra.mxu0 %v1019_v8 }
  0x14   : > { %1024 = vmatprep.subr.bf16.mxu0 %v1023_v11  ;;  %1038 = vmatprep.subr.bf16.mxu1 %v1031_v25 }
  0x16   : > { %975 = vmatmul.mubr.msk.f32.gmra.mrb[2].mxu0 %vm296_vm0, %v280_v18  ;;  %1042 = vmatpush3.bf16.msra.mxu1 %v1031_v25 }
  0x17   : > { %977 = vmatprep.mubr.msk.f32.mxu0 %vm296_vm0, %v281_v19  ;;  %1026 = vmatpush3.bf16.msra.mxu0 %v1023_v11 }
  0x18   : > { %1028 = vmatprep.subr.bf16.mxu0 %v1027_v16 }
  0x1a   : > { %978 = vmatmul.mubr.msk.f32.gmra.mrb[4].mxu0 %vm296_vm0, %v282_v20 }
  0x1b   : > { %980 = vmatprep.mubr.msk.f32.mxu0 %vm296_vm0, %v283_v21  ;;  %1030 = vmatpush3.bf16.msra.mxu0 %v1027_v16 }
  0x1c   : > { %1032 = vmatprep.subr.bf16.mxu0 %v1031_v25 }
  0x1e   : > { %981 = vmatmul.mubr.msk.f32.gmra.mrb[6].mxu0 %vm296_vm0, %v284_v22 }
  0x1f   : > { %1034 = vmatpush3.bf16.msra.mxu0 %v1031_v25 }
  0xe5   : > { %v973_v27 = vpop.f32.mrb[0].mxu0 }
  0xe6   : > { %v393_v28 = vadd.f32 %v973_v27, %v915_v26  ;;  %v387_v29 = vpop.f32.mrb[1].mxu0 }
  0xe7   : > { %v388_v30 = vadd.f32 %v915_v26, %v387_v29 }
  0xe8   : > { %v427_v33 = vmax.f32 %v393_v28, 0.0 }
  0xe9   : > { %v426_v31 = vmax.f32 %v388_v30, 0.0  ;;  %v976_v32 = vpop.f32.mrb[2].mxu0 }
  0xea   : > { %v403_v34 = vadd.f32 %v976_v32, %v915_v26  ;;  %v397_v35 = vpop.f32.mrb[3].mxu0 }
  0xeb   : > { %v398_v36 = vadd.f32 %v915_v26, %v397_v35  ;;  %999 = vmatprep.mubr.msk.f32.mxu0 %vm449_vm1, %v426_v31 }
  0xec   : > { %1000 = vmatmul.mubr.msk.f32.vlgmr.msra.gmra.mrb[8].mxu0 %vm449_vm1, %v427_v33  ;;  %v429_v39 = vmax.f32 %v403_v34, 0.0 }
  0xed   : > { %v428_v37 = vmax.f32 %v398_v36, 0.0  ;;  %v979_v38 = vpop.f32.mrb[4].mxu0 }
  0xee   : > { %v413_v40 = vadd.f32 %v979_v38, %v915_v26  ;;  %v407_v41 = vpop.f32.mrb[5].mxu0 }
  0xef   : > { %v408_v42 = vadd.f32 %v915_v26, %v407_v41  ;;  %1002 = vmatprep.mubr.msk.f32.mxu1 %vm449_vm1, %v428_v37 }
  0xf0   : > { %v431_v43 = vmax.f32 %v413_v40, 0.0  ;;  %1003 = vmatmul.mubr.msk.f32.vlgmr.msra.gmra.mrb[0].mxu1 %vm449_vm1, %v429_v39 }
  0xf1   : > { %v430_v44 = vmax.f32 %v408_v42, 0.0  ;;  %v982_v45 = vpop.f32.mrb[6].mxu0 }
  0xf2   : > { %v423_v46 = vadd.f32 %v982_v45, %v915_v26  ;;  %v417_v47 = vpop.f32.mrb[7].mxu0 }
  0xf3   : > { %v418_v48 = vadd.f32 %v915_v26, %v417_v47  ;;  %1005 = vmatprep.mubr.msk.f32.mxu1 %vm449_vm1, %v430_v44 }
  0xf4   : > { %v433_v49 = vmax.f32 %v423_v46, 0.0  ;;  %1006 = vmatmul.mubr.msk.f32.gmra.mrb[2].mxu1 %vm449_vm1, %v431_v43 }
  0xf5   : > { %v432_v50 = vmax.f32 %v418_v48, 0.0 }
  0xf7   : > { %1008 = vmatprep.mubr.msk.f32.mxu1 %vm449_vm1, %v432_v50 }
  0xf8   : > { %1009 = vmatmul.mubr.msk.f32.gmra.mrb[4].mxu1 %vm449_vm1, %v433_v49 }
 0x1bf   : > { %v1001_v52 = vpop.f32.mrb[8].mxu0 }
 0x1c0   : > { %v1202_v53 = vadd.f32 %v1001_v52, %v924_v51  ;;  %v540_v54 = vpop.f32.mrb[9].mxu0 }
 0x1c1   : > { %v1204_v55 = vadd.f32 %v924_v51, %v540_v54 }
 0x1c2   : > { %v588_v56 = vand.u32 2147483647, %v1202_v53  ;;  %765 = vrot.lane.b32.xlu1 %v1202_v53, %s1093_s9 }
 0x1c3   : > { %v587_v57 = vand.u32 2147483647, %v1204_v55  ;;  %v1004_v58 = vpop.f32.mrb[0].mxu1  ;;  %763 = vrot.lane.b32.xlu0 %v1204_v55, %s1093_s9 }
 0x1c4   : > { %v596_v59 = vsub.f32 0.0, %v588_v56  ;;  %v1212_v60 = vadd.f32 %v1004_v58, %v924_v51  ;;  %v550_v61 = vpop.f32.mrb[1].mxu1 }
 0x1c5   : > { %v595_v62 = vsub.f32 0.0, %v587_v57  ;;  %v1214_v63 = vadd.f32 %v924_v51, %v550_v61 }
 0x1c6   : > { %v605_v0 = vmul.f32 1.442695, %v596_v59  ;;  %v590_v1 = vand.u32 2147483647, %v1212_v60  ;;  %769 = vrot.lane.b32.xlu1 %v1212_v60, %s1093_s9  ;;  %v580_v59 = vmax.f32 %v1202_v53, 0.0 }
 0x1c7   : > { %v603_v2 = vmul.f32 1.442695, %v595_v62  ;;  %v589_v3 = vand.u32 2147483647, %v1214_v63  ;;  %v1007_v4 = vpop.f32.mrb[2].mxu1  ;;  %767 = vrot.lane.b32.xlu0 %v1214_v63, %s1093_s9 }
 0x1c8   : > { %1053 = vpow2.f32 %v605_v0  ;;  %v598_v5 = vsub.f32 0.0, %v590_v1  ;;  %v1222_v6 = vadd.f32 %v1007_v4, %v924_v51  ;;  %v560_v7 = vpop.f32.mrb[3].mxu1 }
 0x1c9   : > { %1055 = vpow2.f32 %v603_v2  ;;  %v597_v8 = vsub.f32 0.0, %v589_v3  ;;  %v1224_v9 = vadd.f32 %v924_v51, %v560_v7 }
 0x1ca   : > { %v609_v10 = vmul.f32 1.442695, %v598_v5  ;;  %v592_v11 = vand.u32 2147483647, %v1222_v6  ;;  %773 = vrot.lane.b32.xlu1 %v1222_v6, %s1093_s9 }
 0x1cb   : > { %v607_v12 = vmul.f32 1.442695, %v597_v8  ;;  %v591_v13 = vand.u32 2147483647, %v1224_v9  ;;  %v1010_v14 = vpop.f32.mrb[4].mxu1  ;;  %771 = vrot.lane.b32.xlu0 %v1224_v9, %s1093_s9  ;;  %v582_v8 = vmax.f32 %v1212_v60, 0.0 }
 0x1cc   : > { %1057 = vpow2.f32 %v609_v10  ;;  %v600_v15 = vsub.f32 0.0, %v592_v11  ;;  %v1232_v16 = vadd.f32 %v1010_v14, %v924_v51  ;;  %v570_v17 = vpop.f32.mrb[5].mxu1 }
 0x1cd   : > { %1059 = vpow2.f32 %v607_v12  ;;  %v599_v18 = vsub.f32 0.0, %v591_v13  ;;  %v1234_v19 = vadd.f32 %v924_v51, %v570_v17  ;;  %v579_v13 = vmax.f32 %v1204_v55, 0.0 }
 0x1ce   : > { %v613_v20 = vmul.f32 1.442695, %v600_v15  ;;  %v594_v21 = vand.u32 2147483647, %v1232_v16  ;;  %777 = vrot.lane.b32.xlu1 %v1232_v16, %s1093_s9 }
 0x1cf   : > { %v611_v22 = vmul.f32 1.442695, %v599_v18  ;;  %v593_v23 = vand.u32 2147483647, %v1234_v19  ;;  %775 = vrot.lane.b32.xlu0 %v1234_v19, %s1093_s9 }
 0x1d0   : > { %1061 = vpow2.f32 %v613_v20  ;;  %v602_v24 = vsub.f32 0.0, %v594_v21 }
 0x1d1   : > { %1063 = vpow2.f32 %v611_v22  ;;  %v601_v25 = vsub.f32 0.0, %v593_v23 }
 0x1d2   : > { %v1054_v26 = vpop.eup %1053  ;;  %v617_v27 = vmul.f32 1.442695, %v602_v24 }
 0x1d3   : > { %v1056_v28 = vpop.eup %1055  ;;  %v615_v29 = vmul.f32 1.442695, %v601_v25  ;;  %v628_v30 = vadd.f32 1.0, %v1054_v26  ;;  %v631_v36 = vmul.f32 -0.5, %v1054_v26  ;;  %v634_v45 = vand.u32 2147483647, %v1054_v26 }
 0x1d4   : > { %1065 = vpow2.f32 %v617_v27  ;;  %v619_v31 = vadd.f32 1.0, %v1056_v28  ;;  %v622_v39 = vmul.f32 -0.5, %v1056_v28  ;;  %v625_v46 = vand.u32 2147483647, %v1056_v28 }
 0x1d5   : > { %1067 = vpow2.f32 %v615_v29  ;;  %v632_v43 = vadd.f32 1.0, %v631_v36  ;;  %vm635_vm2 = vcmp.lt.f32.partialorder %v634_v45, 0.0004427343 }
 0x1d6   : > { %v1058_v32 = vpop.eup %1057  ;;  %1069 = vlog2.f32 %v628_v30  ;;  %v623_v48 = vadd.f32 1.0, %v622_v39  ;;  %vm1258_vm3 = vcmp.lt.f32.partialorder %v625_v46, 0.0004427343 }
 0x1d7   : > { %v1242_v33 = vpop.eup %1059  ;;  %v646_v34 = vadd.f32 1.0, %v1058_v32  ;;  %1071 = vlog2.f32 %v619_v31  ;;  %v649_v41 = vmul.f32 -0.5, %v1058_v32  ;;  %v633_v56 = vmul.f32 %v1054_v26, %v632_v43 }
 0x1d8   : > { %v637_v35 = vadd.f32 1.0, %v1242_v33  ;;  %v652_v57 = vand.u32 2147483647, %v1058_v32  ;;  %v640_v62 = vmul.f32 -0.5, %v1242_v33  ;;  %v624_v3 = vmul.f32 %v1056_v28, %v623_v48 }
 0x1d9   : > { %1073 = vlog2.f32 %v646_v34  ;;  %v650_v51 = vadd.f32 1.0, %v649_v41  ;;  %v643_v21 = vand.u32 2147483647, %v1242_v33 }
 0x1da   : > { %v1245_v37 = vpop.eup %1061  ;;  %1075 = vlog2.f32 %v637_v35  ;;  %vm653_vm4 = vcmp.lt.f32.partialorder %v652_v57, 0.0004427343  ;;  %v641_v14 = vadd.f32 1.0, %v640_v62 }
 0x1db   : > { %v1247_v38 = vpop.eup %1063  ;;  %v664_v40 = vadd.f32 1.0, %v1245_v37  ;;  %v651_v7 = vmul.f32 %v1058_v32, %v650_v51  ;;  %v667_v17 = vmul.f32 -0.5, %v1245_v37  ;;  %v670_v26 = vand.u32 2147483647, %v1245_v37 }
 0x1dc   : > { %v655_v42 = vadd.f32 1.0, %v1247_v38  ;;  %v658_v18 = vmul.f32 -0.5, %v1247_v38  ;;  %v642_v25 = vmul.f32 %v1242_v33, %v641_v14  ;;  %vm644_vm5 = vcmp.lt.f32.partialorder %v643_v21, 0.0004427343 }
 0x1dd   : > { %1077 = vlog2.f32 %v664_v40  ;;  %v668_v27 = vadd.f32 1.0, %v667_v17  ;;  %v661_v31 = vand.u32 2147483647, %v1247_v38  ;;  %v581_v33 = vmax.f32 %v1214_v63, 0.0  ;;  %v702_v17 = vld [vmem:[%s1312_s13 + $0x18] sm:$0xff] }
 0x1de   : > { %v1251_v44 = vpop.eup %1065  ;;  %1079 = vlog2.f32 %v655_v42  ;;  %v659_v28 = vadd.f32 1.0, %v658_v18  ;;  %vm1282_vm6 = vcmp.lt.f32.partialorder %v670_v26, 0.0004427343  ;;  %v699_v18 = vld [vmem:[%s1312_s13] sm:$0xff] }
 0x1df   : > { %v1253_v47 = vpop.eup %1067  ;;  %v682_v49 = vadd.f32 1.0, %v1251_v44  ;;  %v685_v29 = vmul.f32 -0.5, %v1251_v44  ;;  %v669_v41 = vmul.f32 %v1245_v37, %v668_v27  ;;  %vm662_vm7 = vcmp.lt.f32.partialorder %v661_v31, 0.0004427343 }
 0x1e0   : > { %v1070_v50 = vpop.eup %1069  ;;  %v673_v52 = vadd.f32 1.0, %v1253_v47  ;;  %v676_v30 = vmul.f32 -0.5, %v1253_v47  ;;  %v660_v42 = vmul.f32 %v1247_v38, %v659_v28  ;;  %v688_v48 = vand.u32 2147483647, %v1251_v44 }
 0x1e1   : > { %v630_v54 = vmul.f32 0.6931472, %v1070_v50  ;;  %v1072_v58 = vpop.eup %1071  ;;  %1081 = vlog2.f32 %v682_v49  ;;  %v686_v43 = vadd.f32 1.0, %v685_v29  ;;  %v679_v49 = vand.u32 2147483647, %v1253_v47 }
 0x1e2   : > { %v621_v2 = vmul.f32 0.6931472, %v1072_v58  ;;  %1083 = vlog2.f32 %v673_v52  ;;  %v677_v45 = vadd.f32 1.0, %v676_v30  ;;  %v584_v37 = vmax.f32 %v1222_v6, 0.0 }
 0x1e3   : > { %v1074_v0 = vpop.eup %1073  ;;  %v636_v1 = vsel %vm635_vm2, %v633_v56, %v630_v54  ;;  %v583_v38 = vmax.f32 %v1224_v9, 0.0  ;;  %v687_v56 = vmul.f32 %v1251_v44, %v686_v43  ;;  %vm689_vm8 = vcmp.lt.f32.partialorder %v688_v48, 0.0004427343 }
 0x1e4   : > { %v692_v4 = vadd.f32 %v636_v1, %v580_v59  ;;  %v648_v5 = vmul.f32 0.6931472, %v1074_v0  ;;  %v627_v10 = vsel %vm1258_vm3, %v624_v3, %v621_v2  ;;  %v1076_v11 = vpop.eup %1075  ;;  %v678_v57 = vmul.f32 %v1253_v47, %v677_v45 }
 0x1e5   : > { %v691_v20 = vadd.f32 %v627_v10, %v579_v13  ;;  %v639_v23 = vmul.f32 0.6931472, %v1076_v11  ;;  %vm680_vm9 = vcmp.lt.f32.partialorder %v679_v49, 0.0004427343  ;;  %v586_v0 = vmax.f32 %v1232_v16, 0.0  ;;  %v706_v49 = vld [vmem:[%s1312_s13 + $0x38] sm:$0xff] }
 0x1e6   : > { %789 = vrot.lane.b32.xlu1 %v692_v4, %s1093_s9  ;;  %717 = vrot.lane.b32.xlu0 %v692_v4, %s1094_s10  ;;  %v654_v12 = vsel %vm653_vm4, %v651_v7, %v648_v5  ;;  %v585_v1 = vmax.f32 %v1234_v19, 0.0 }
 0x1e7   : > { %v694_v15 = vadd.f32 %v654_v12, %v582_v8  ;;  %v1078_v22 = vpop.eup %1077  ;;  %v645_v34 = vsel %vm644_vm5, %v642_v25, %v639_v23  ;;  %v700_v12 = vld [vmem:[%s1312_s13 + $0x8] sm:$0xff] }
 0x1e8   : > { %v1080_v24 = vpop.eup %1079  ;;  %v666_v35 = vmul.f32 0.6931472, %v1078_v22  ;;  %v693_v46 = vadd.f32 %v645_v34, %v581_v33  ;;  %v703_v33 = vld [vmem:[%s1312_s13 + $0x20] sm:$0xff] }
 0x1e9   : > { %v657_v36 = vmul.f32 0.6931472, %v1080_v24 }
 0x1ea   : > { %721 = vrot.lane.b32.xlu1 %v694_v15, %s1094_s10  ;;  %715 = vrot.lane.b32.xlu0 %v691_v20, %s1094_s10  ;;  %v672_v50 = vsel %vm1282_vm6, %v669_v41, %v666_v35  ;;  %v701_v35 = vld [vmem:[%s1312_s13 + $0x10] sm:$0xff] }
 0x1eb   : > { %v1082_v32 = vpop.eup %1081  ;;  %v663_v51 = vsel %vm662_vm7, %v660_v42, %v657_v36  ;;  %v696_v58 = vadd.f32 %v672_v50, %v584_v37  ;;  %v705_v50 = vld [vmem:[%s1312_s13 + $0x30] sm:$0xff] }
 0x1ec   : > { %v1084_v39 = vpop.eup %1083  ;;  %v684_v52 = vmul.f32 0.6931472, %v1082_v32  ;;  %v695_v59 = vadd.f32 %v663_v51, %v583_v38 }
 0x1ed   : > { %v675_v54 = vmul.f32 0.6931472, %v1084_v39  ;;  %v704_v39 = vld [vmem:[%s1312_s13 + $0x28] sm:$0xff] }
 0x1ee   : > { %793 = vrot.lane.b32.xlu1 %v694_v15, %s1093_s9  ;;  %787 = vrot.lane.b32.xlu0 %v691_v20, %s1093_s9  ;;  %v690_v61 = vsel %vm689_vm8, %v687_v56, %v684_v52 }
 0x1ef   : > { %v681_v62 = vsel %vm680_vm9, %v678_v57, %v675_v54  ;;  %v698_v2 = vadd.f32 %v690_v61, %v586_v0 }
 0x1f0   : > { %v697_v3 = vadd.f32 %v681_v62, %v585_v1 }
 0x1f2   : > { %719 = vrot.lane.b32.xlu1 %v693_v46, %s1094_s10  ;;  %791 = vrot.lane.b32.xlu0 %v693_v46, %s1093_s9 }
 0x1f6   : > { %725 = vrot.lane.b32.xlu1 %v696_v58, %s1094_s10  ;;  %723 = vrot.lane.b32.xlu0 %v695_v59, %s1094_s10 }
 0x1fa   : > { %729 = vrot.lane.b32.xlu1 %v698_v2, %s1094_s10  ;;  %727 = vrot.lane.b32.xlu0 %v697_v3, %s1094_s10 }
 0x1fe   : > { %797 = vrot.lane.b32.xlu1 %v696_v58, %s1093_s9  ;;  %795 = vrot.lane.b32.xlu0 %v695_v59, %s1093_s9 }
 0x202   : > { %801 = vrot.lane.b32.xlu1 %v698_v2, %s1093_s9  ;;  %799 = vrot.lane.b32.xlu0 %v697_v3, %s1093_s9 }
 0x234   : > { %v766_v44 = vpop.permute.xlu1 %765 }
 0x235   : > { %v764_v47 = vpop.permute.xlu0 %763 }
 0x238   : > { %v770_v4 = vpop.permute.xlu1 %769 }
 0x239   : > { %v768_v5 = vpop.permute.xlu0 %767 }
 0x23c   : > { %v774_v7 = vpop.permute.xlu1 %773 }
 0x23d   : > { %v772_v8 = vpop.permute.xlu0 %771 }
 0x240   : > { %v778_v10 = vpop.permute.xlu1 %777 }
 0x241   : > { %v776_v11 = vpop.permute.xlu0 %775 }
 0x258   : > { %v790_v13 = vpop.permute.xlu1 %789  ;;  %v718_v14 = vpop.permute.xlu0 %717 }
 0x259   : > { %v740_v15 = vmul.f32 %v718_v14, %v700_v12 }
 0x25b   : > { %v748_v20 = vadd.f32 %v740_v15, %v1202_v53 }
 0x25c   : > { %v722_v21 = vpop.permute.xlu1 %721  ;;  %v716_v22 = vpop.permute.xlu0 %715 }
 0x25d   : > { %v812_v23 = vsel %vm296_vm0, %v748_v20, %v766_v44  ;;  %v742_v24 = vmul.f32 %v722_v21, %v702_v17  ;;  %v739_v25 = vmul.f32 %v716_v22, %v699_v18 }
 0x25e   : > { %v820_v26 = vsel %vm449_vm1, %v812_v23, %v790_v13 }
 0x25f   : > { %829 = vst.msk [vmem:[%s1322_s17 + $0x8] sm:$0xff] %vm827_vm10, %v820_v26  ;;  %v750_v53 = vadd.f32 %v742_v24, %v1212_v60  ;;  %v747_v27 = vadd.f32 %v739_v25, %v1204_v55 }
 0x260   : > { %v794_v28 = vpop.permute.xlu1 %793  ;;  %v788_v29 = vpop.permute.xlu0 %787 }
 0x261   : > { %v814_v30 = vsel %vm296_vm0, %v750_v53, %v770_v4  ;;  %v811_v31 = vsel %vm296_vm0, %v747_v27, %v764_v47 }
 0x262   : > { %v822_v32 = vsel %vm449_vm1, %v814_v30, %v794_v28  ;;  %v819_v34 = vsel %vm449_vm1, %v811_v31, %v788_v29 }
 0x263   : > { %831 = vst.msk [vmem:[%s1322_s17 + $0x18] sm:$0xff] %vm827_vm10, %v822_v32  ;;  %828 = vst.msk [vmem:[%s1322_s17] sm:$0xff] %vm827_vm10, %v819_v34 }
 0x264   : > { %v720_v60 = vpop.permute.xlu1 %719  ;;  %v792_v55 = vpop.permute.xlu0 %791 }
 0x265   : > { %v741_v36 = vmul.f32 %v720_v60, %v701_v35 }
 0x267   : > { %v749_v40 = vadd.f32 %v741_v36, %v1214_v63 }
 0x268   : > { %v726_v41 = vpop.permute.xlu1 %725  ;;  %v724_v42 = vpop.permute.xlu0 %723 }
 0x269   : > { %v813_v43 = vsel %vm296_vm0, %v749_v40, %v768_v5  ;;  %v744_v45 = vmul.f32 %v726_v41, %v704_v39  ;;  %v743_v46 = vmul.f32 %v724_v42, %v703_v33 }
 0x26a   : > { %v821_v48 = vsel %vm449_vm1, %v813_v43, %v792_v55 }
 0x26b   : > { %830 = vst.msk [vmem:[%s1322_s17 + $0x10] sm:$0xff] %vm827_vm10, %v821_v48  ;;  %v752_v51 = vadd.f32 %v744_v45, %v1222_v6  ;;  %v751_v52 = vadd.f32 %v743_v46, %v1224_v9 }
 0x26c   : > { %v730_v54 = vpop.permute.xlu1 %729  ;;  %v728_v63 = vpop.permute.xlu0 %727 }
 0x26d   : > { %v746_v37 = vmul.f32 %v730_v54, %v706_v49  ;;  %v745_v38 = vmul.f32 %v728_v63, %v705_v50  ;;  %v816_v58 = vsel %vm296_vm0, %v752_v51, %v774_v7  ;;  %v815_v61 = vsel %vm296_vm0, %v751_v52, %v772_v8 }
 0x26f   : > { %v754_v56 = vadd.f32 %v746_v37, %v1232_v16  ;;  %v753_v57 = vadd.f32 %v745_v38, %v1234_v19 }
 0x270   : > { %v798_v59 = vpop.permute.xlu1 %797  ;;  %v796_v62 = vpop.permute.xlu0 %795 }
 0x271   : > { %v824_v6 = vsel %vm449_vm1, %v816_v58, %v798_v59  ;;  %v823_v9 = vsel %vm449_vm1, %v815_v61, %v796_v62  ;;  %v818_v16 = vsel %vm296_vm0, %v754_v56, %v778_v10  ;;  %v817_v19 = vsel %vm296_vm0, %v753_v57, %v776_v11 }
 0x272   : > { %833 = vst.msk [vmem:[%s1322_s17 + $0x28] sm:$0xff] %vm827_vm10, %v824_v6  ;;  %832 = vst.msk [vmem:[%s1322_s17 + $0x20] sm:$0xff] %vm827_vm10, %v823_v9 }
 0x274   : > { %v802_v0 = vpop.permute.xlu1 %801  ;;  %v800_v1 = vpop.permute.xlu0 %799 }
 0x275   : > { %v826_v2 = vsel %vm449_vm1, %v818_v16, %v802_v0  ;;  %v825_v3 = vsel %vm449_vm1, %v817_v19, %v800_v1 }
 0x276   : > { %835 = vst.msk [vmem:[%s1322_s17 + $0x38] sm:$0xff] %vm827_vm10, %v826_v2  ;;  %834 = vst.msk [vmem:[%s1322_s17 + $0x30] sm:$0xff] %vm827_vm10, %v825_v3 }
 0x277 PF: > { %s16_s21 = sadd.s32 1, %s1091_s21  }
 0x278   : > { %p13_p4 = scmp.ge.s32.totalorder %s16_s21, 4  }
 0x27a   :  { %15 = sbr.rel (!%p13_p4) target bundleno = 1 (0x1), region = 77 }

</bundles_post_ra>
